<compile_context>
chip_gen: v7x
topology: tpu7x:2x2x1
jax: 0.10.0
libtpu: 0.0.40
codegen_flags: <defaults>
</compile_context>

<pallas_src>
import functools

import jax
import jax.numpy as jnp
from jax.experimental import pallas as pl
from jax.experimental.pallas import tpu as pltpu

N_EMBD = 64
HIDDEN = 4 * N_EMBD          # 256
TM_MAX_TOKENS = 8192         # tokens per row tile (review: 4096-8192)


def _ffn_kernel(x_ref, w1_ref, b1_ref, w2_ref, b2_ref, o_ref):
    # x_ref : (TM, p*C) f32      w1_ref: (p*C, p*H) bf16   b1_ref: (1, p*H) f32
    # w2_ref: (p*H, p*C) bf16    b2_ref: (1, p*C) f32      o_ref : (TM, p*C) f32
    x = x_ref[...].astype(jnp.bfloat16)                      # cast in-kernel (VPU)
    h = jnp.dot(x, w1_ref[...], preferred_element_type=jnp.float32)
    h = jnp.maximum(h + b1_ref[...], 0.0)                    # bias + ReLU in f32 (v5e VPU)
    out = jnp.dot(h.astype(jnp.bfloat16), w2_ref[...],
                  preferred_element_type=jnp.float32)
    o_ref[...] = (out + b2_ref[...]).astype(o_ref.dtype)


def _block_diag(w, p):
    """p copies of w on the diagonal: (Cin, Cout) -> (p*Cin, p*Cout)."""
    if p == 1:
        return w
    cin, cout = w.shape
    eye = jnp.eye(p, dtype=w.dtype)
    return (eye[:, None, :, None] * w[None, :, None, :]).reshape(p * cin, p * cout)


def _pick_pack(m):
    for p in (4, 2):
        if m % p == 0:
            return p
    return 1


def _pick_tile(mp_rows, p, tm_max_tokens):
    tm_max_rows = max(8, (tm_max_tokens // p) // 8 * 8)
    if mp_rows > tm_max_rows:
        return tm_max_rows                  # multiple of 8; last grid block may be ragged
    if mp_rows >= 16 and mp_rows % 16 == 0:
        return mp_rows // 2                 # 2 grid steps -> feeds both v7x TensorCores
    return mp_rows                          # single block spanning the full row dim (legal)


@functools.partial(jax.jit, static_argnames=("tm_max_tokens",))
def feed_forward(x, w1, b1, w2, b2, *, tm_max_tokens=TM_MAX_TOKENS):
    """x: (..., C) float32. Returns same shape/dtype as x."""
    orig_shape = x.shape
    C = orig_shape[-1]
    H = w1.shape[-1]
    M = 1
    for d in orig_shape[:-1]:
        M *= d

    p = _pick_pack(M)
    Mp, PC, PH = M // p, p * C, p * H

    # Free (row-major) reshape: p consecutive tokens share one lane-row.
    x_packed = x.reshape(Mp, PC)

    # Block-diagonal weights / tiled biases (tiny, built once per call).
    w1_p = _block_diag(w1, p).astype(jnp.bfloat16)
    w2_p = _block_diag(w2, p).astype(jnp.bfloat16)
    b1_p = jnp.tile(b1.astype(jnp.float32), p).reshape(1, PH)
    b2_p = jnp.tile(b2.astype(jnp.float32), p).reshape(1, PC)

    TM = _pick_tile(Mp, p, tm_max_tokens)
    grid = (pl.cdiv(Mp, TM),)

    flops = 2 * Mp * (PC * PH + PH * PC)
    bytes_accessed = (
        Mp * PC * 4                   # x stream in (f32, native dtype)
        + Mp * PC * 4                 # out stream (f32)
        + (PC * PH + PH * PC) * 2     # block-diag weights (bf16, read once)
        + (PH + PC) * 4               # biases (f32)
    )

    out_packed = pl.pallas_call(
        _ffn_kernel,
        out_shape=jax.ShapeDtypeStruct((Mp, PC), jnp.float32),
        grid=grid,
        in_specs=[
            pl.BlockSpec((TM, PC), lambda i: (i, 0)),   # activations: streamed
            pl.BlockSpec((PC, PH), lambda i: (0, 0)),   # w1: resident in VMEM
            pl.BlockSpec((1, PH), lambda i: (0, 0)),    # b1: resident
            pl.BlockSpec((PH, PC), lambda i: (0, 0)),   # w2: resident
            pl.BlockSpec((1, PC), lambda i: (0, 0)),    # b2: resident
        ],
        out_specs=pl.BlockSpec((TM, PC), lambda i: (i, 0)),
        compiler_params=pltpu.CompilerParams(
            dimension_semantics=("parallel",),
            vmem_limit_bytes=48 * 1024 * 1024),
        cost_estimate=pl.CostEstimate(
            flops=flops, transcendentals=0, bytes_accessed=bytes_accessed),
    )(x_packed, w1_p, b1_p, w2_p, b2_p)

    return out_packed.reshape(orig_shape).astype(x.dtype)


def init_params(key, n_embd=N_EMBD):
    """Deterministic init mirroring nn.Linear's default uniform(-1/sqrt(fan_in), +)."""
    k1, k2, k3, k4 = jax.random.split(key, 4)
    hidden = 4 * n_embd
    bound1 = 1.0 / (n_embd ** 0.5)
    bound2 = 1.0 / (hidden ** 0.5)
    # Stored as (in_features, out_features) == transpose of PyTorch's weight layout.
    w1 = jax.random.uniform(k1, (n_embd, hidden), jnp.float32, -bound1, bound1)
    b1 = jax.random.uniform(k2, (hidden,), jnp.float32, -bound1, bound1)
    w2 = jax.random.uniform(k3, (hidden, n_embd), jnp.float32, -bound2, bound2)
    b2 = jax.random.uniform(k4, (n_embd,), jnp.float32, -bound2, bound2)
    return w1, b1, w2, b2


def _reference(x, w1, b1, w2, b2):
    C_ = x.shape[-1]
    h = jnp.maximum(x.reshape(-1, C_) @ w1 + b1, 0.0)
    return (h @ w2 + b2).reshape(x.shape)


if __name__ == "__main__":
    key = jax.random.PRNGKey(0)
    kx, kp, kx2, kx3, kx4 = jax.random.split(key, 5)
    w1, b1, w2, b2 = init_params(kp)
    TOL = dict(atol=3e-2, rtol=3e-2)   # bf16 matmul inputs -> looser than pure f32

    # 1) Small demo shape: single packed tile (p=4, one grid step).
    B, T, C = 2, 8, N_EMBD
    x = jax.random.normal(kx, (B, T, C), dtype=jnp.float32)
    out = jax.block_until_ready(feed_forward(x, w1, b1, w2, b2))
    assert out.shape == (B, T, C)
    assert jnp.allclose(out, _reference(x, w1, b1, w2, b2), **TOL), "mismatch (small)"

    # 2) Two-step grid (p=4, Mp=512 -> TM=256, grid=2).
    x2 = jax.random.normal(kx2, (4, 512, C), dtype=jnp.float32)
    out2 = jax.block_until_ready(feed_forward(x2, w1, b1, w2, b2))
    assert jnp.allclose(out2, _reference(x2, w1, b1, w2, b2), **TOL), "mismatch (2-step)"

    # 3) Ragged-last-block path (force a small tile: Mp=375, TM=128, grid=3).
    x3 = jax.random.normal(kx3, (3, 500, C), dtype=jnp.float32)
    out3 = jax.block_until_ready(feed_forward(x3, w1, b1, w2, b2, tm_max_tokens=512))
    assert jnp.allclose(out3, _reference(x3, w1, b1, w2, b2), **TOL), "mismatch (ragged)"

    # 4) Odd token count -> p=1 fallback (no packing).
    x4 = jax.random.normal(kx4, (1, 7, C), dtype=jnp.float32)
    out4 = jax.block_until_ready(feed_forward(x4, w1, b1, w2, b2))
    assert jnp.allclose(out4, _reference(x4, w1, b1, w2, b2), **TOL), "mismatch (odd M)"

    print("KERNEL_OK")
</pallas_src>

<mosaic_0001>
module attributes {stable_mosaic.version = 11 : i64} {
  func.func @_ffn_kernel(%arg0: i32, %arg1: memref<4x256xf32, #tpu.memory_space<vmem>>, %arg2: memref<256x1024xbf16, #tpu.memory_space<vmem>>, %arg3: memref<1x1024xf32, #tpu.memory_space<vmem>>, %arg4: memref<1024x256xbf16, #tpu.memory_space<vmem>>, %arg5: memref<1x256xf32, #tpu.memory_space<vmem>>, %arg6: memref<4x256xf32, #tpu.memory_space<vmem>>) attributes {dimension_semantics = [#tpu.dimension_semantics<parallel>], iteration_bounds = array<i64: 1>, scalar_prefetch = 0 : i64, scratch_operands = 0 : i64, tpu.core_type = #tpu.core_type<tc>, window_params = [{transform_indices = @transform_0, window_bounds = array<i64: 4, 256>}, {pipeline_mode = #tpu.pipeline_mode<synchronous>, transform_indices = @transform_1, window_bounds = array<i64: 256, 1024>}, {pipeline_mode = #tpu.pipeline_mode<synchronous>, transform_indices = @transform_2, window_bounds = array<i64: 1, 1024>}, {pipeline_mode = #tpu.pipeline_mode<synchronous>, transform_indices = @transform_3, window_bounds = array<i64: 1024, 256>}, {pipeline_mode = #tpu.pipeline_mode<synchronous>, transform_indices = @transform_4, window_bounds = array<i64: 1, 256>}, {transform_indices = @transform_5, window_bounds = array<i64: 4, 256>}]} {
    %c0 = arith.constant 0 : index
    %c0_0 = arith.constant 0 : index
    %0 = vector.load %arg1[%c0, %c0_0] : memref<4x256xf32, #tpu.memory_space<vmem>>, vector<4x256xf32>
    %1 = arith.truncf %0 : vector<4x256xf32> to vector<4x256xbf16>
    %c0_1 = arith.constant 0 : index
    %c0_2 = arith.constant 0 : index
    %2 = vector.load %arg2[%c0_1, %c0_2] : memref<256x1024xbf16, #tpu.memory_space<vmem>>, vector<256x1024xbf16>
    %cst = arith.constant dense<0.000000e+00> : vector<4x1024xf32>
    %3 = tpu.matmul %1, %2, %cst {dimension_numbers = #tpu.dot_dimension_numbers<[1], [0], [0], [1], [0, 0, 1, 1], [], []>} : vector<4x256xbf16>, vector<256x1024xbf16>, vector<4x1024xf32> -> vector<4x1024xf32>
    %c0_3 = arith.constant 0 : index
    %c0_4 = arith.constant 0 : index
    %4 = vector.load %arg3[%c0_3, %c0_4] : memref<1x1024xf32, #tpu.memory_space<vmem>>, vector<1x1024xf32>
    %5 = vector.broadcast %4 : vector<1x1024xf32> to vector<4x1024xf32>
    %6 = arith.addf %3, %5 : vector<4x1024xf32>
    %cst_5 = arith.constant 0.000000e+00 : f32
    %7 = vector.broadcast %cst_5 : f32 to vector<4x1024xf32>
    %8 = arith.maximumf %6, %7 : vector<4x1024xf32>
    %9 = arith.truncf %8 : vector<4x1024xf32> to vector<4x1024xbf16>
    %c0_6 = arith.constant 0 : index
    %c0_7 = arith.constant 0 : index
    %10 = vector.load %arg4[%c0_6, %c0_7] : memref<1024x256xbf16, #tpu.memory_space<vmem>>, vector<1024x256xbf16>
    %cst_8 = arith.constant dense<0.000000e+00> : vector<4x256xf32>
    %11 = tpu.matmul %9, %10, %cst_8 {dimension_numbers = #tpu.dot_dimension_numbers<[1], [0], [0], [1], [0, 0, 1, 1], [], []>} : vector<4x1024xbf16>, vector<1024x256xbf16>, vector<4x256xf32> -> vector<4x256xf32>
    %c0_9 = arith.constant 0 : index
    %c0_10 = arith.constant 0 : index
    %12 = vector.load %arg5[%c0_9, %c0_10] : memref<1x256xf32, #tpu.memory_space<vmem>>, vector<1x256xf32>
    %13 = vector.broadcast %12 : vector<1x256xf32> to vector<4x256xf32>
    %14 = arith.addf %11, %13 : vector<4x256xf32>
    %c0_11 = arith.constant 0 : index
    %c0_12 = arith.constant 0 : index
    %15 = vector.load %arg6[%c0_11, %c0_12] : memref<4x256xf32, #tpu.memory_space<vmem>>, vector<4x256xf32>
    tpu.vector_store %arg6[%c0_11, %c0_12], %14 {strides = array<i32>} : memref<4x256xf32, #tpu.memory_space<vmem>>, vector<4x256xf32>,
    return
  }
  func.func @transform_0(%arg0: i32) -> (i32, i32) {
    %c0_i32 = arith.constant 0 : i32
    %c0_i32_0 = arith.constant 0 : i32
    return %arg0, %c0_i32 : i32, i32
  }
  func.func @transform_1(%arg0: i32) -> (i32, i32) {
    %c0_i32 = arith.constant 0 : i32
    %c0_i32_0 = arith.constant 0 : i32
    %c0_i32_1 = arith.constant 0 : i32
    return %c0_i32, %c0_i32_0 : i32, i32
  }
  func.func @transform_2(%arg0: i32) -> (i32, i32) {
    %c0_i32 = arith.constant 0 : i32
    %c0_i32_0 = arith.constant 0 : i32
    %c0_i32_1 = arith.constant 0 : i32
    return %c0_i32, %c0_i32_0 : i32, i32
  }
  func.func @transform_3(%arg0: i32) -> (i32, i32) {
    %c0_i32 = arith.constant 0 : i32
    %c0_i32_0 = arith.constant 0 : i32
    %c0_i32_1 = arith.constant 0 : i32
    return %c0_i32, %c0_i32_0 : i32, i32
  }
  func.func @transform_4(%arg0: i32) -> (i32, i32) {
    %c0_i32 = arith.constant 0 : i32
    %c0_i32_0 = arith.constant 0 : i32
    %c0_i32_1 = arith.constant 0 : i32
    return %c0_i32, %c0_i32_0 : i32, i32
  }
  func.func @transform_5(%arg0: i32) -> (i32, i32) {
    %c0_i32 = arith.constant 0 : i32
    %c0_i32_0 = arith.constant 0 : i32
    return %arg0, %c0_i32 : i32, i32
  }
}

</mosaic_0001>

<bundles_post_ra>
// kernel: tile.18
= control target key start
LH: loop header
LB: loop body
LE: loop exit
PB: predicated region body
PF: predicated region fallthrough
CT: control target
= control target key end

     0   :  { %s22_s0 = inlined_call_operand.vmem [shape: f32[64], index: 0, kind: input, shape index: {}]   ;;  %s23_s1 = inlined_call_operand.vmem [shape: f32[4,64], index: 1, kind: output, shape index: {}]  }
   0x1   :  { %v4_v0 = vld [vmem:[%s22_s0] ss:$0 sm:$0xff] }
   0x2   :  { %5 = vst [vmem:[%s23_s1] sm:$0xf] %v4_v0 }

// kernel: tile.19
= control target key start
LH: loop header
LB: loop body
LE: loop exit
PB: predicated region body
PF: predicated region fallthrough
CT: control target
= control target key end

     0   :  { %s6_s8 = smov 3  ;;  %vm8_vm0 = vcmask 523264   ;;  %s30_s9 = smov 64   ;;  %vm15_vm1 = vcmask 1048064   ;;  %s50_s0 = inlined_call_operand.vmem [shape: f32[4,64], index: 0, kind: input, shape index: {}]   ;;  %s51_s1 = inlined_call_operand.vmem [shape: f32[1,256], index: 1, kind: output, shape index: {}]  }
   0x1   :  { %v4_v0 = vld [vmem:[%s50_s0] sm:$0xf]  ;;  %s11_s0 = smov 3 }
   0x2   :  { %5 = vst [vmem:[#allocation1] sm:$0xf] %v4_v0 }
   0x9   :  { %v12_v1 = vld [vmem:[#allocation1 + $0x1] ss:$2 sm:%s11_s0]   ;;  %v7_v2 = vld [vmem:[#allocation1] ss:$2 sm:%s6_s8]  }
   0xa   :  { %13 = vrot.lane.b32.xlu0 %v12_v1, %s30_s9  ;;  %9 = vst.msk [vmem:[#allocation0] ss:$8 sm:$0x3] %vm8_vm0, %v7_v2  }
  0x7c   :  { %v14_v3 = vpop.permute.xlu0 %13  }
  0x7d   :  { %16 = vst.msk [vmem:[#allocation0] ss:$8 sm:$0x3] %vm15_vm1, %v14_v3  }
  0x84   :  { %v20_v4 = vld [vmem:[#allocation0] sm:$0x1]  ;;  %v24_v5 = vld [vmem:[#allocation0 + $0x8] sm:$0x1] }
  0x85   :  { %22 = vst [vmem:[%s51_s1] sm:$0x1] %v20_v4  ;;  %28 = vst [vmem:[%s51_s1 + $0x1] sm:$0x1] %v24_v5 }

// kernel: feed_forward.1
= control target key start
LH: loop header
LB: loop body
LE: loop exit
PB: predicated region body
PF: predicated region fallthrough
CT: control target
= control target key end

     0   :  { %s3288_s1 = inlined_call_operand.vmem [shape: bf16[256,1024], index: 1, kind: input, shape index: {}]   ;;  %s3289_s0 = inlined_call_operand.vmem [shape: f32[4,256], index: 0, kind: input, shape index: {}]   ;;  %s3290_s3 = inlined_call_operand.vmem [shape: bf16[1024,256], index: 3, kind: input, shape index: {}]   ;;  %s3291_s2 = inlined_call_operand.vmem [shape: f32[1,1024], index: 2, kind: input, shape index: {}]   ;;  %s3292_s4 = inlined_call_operand.vmem [shape: f32[1,256], index: 4, kind: input, shape index: {}]   ;;  %s3293_s5 = inlined_call_operand.vmem [shape: f32[4,256], index: 5, kind: output, shape index: {}]  }
   0x1   :  { %v26_v0 = vld [vmem:[%s3288_s1] sm:$0xff] }
   0x2   :  { %v30_v1 = vld [vmem:[%s3288_s1 + $0x20] sm:$0xff] }
   0x3   :  { %v34_v2 = vld [vmem:[%s3288_s1 + $0x40] sm:$0xff]  ;;  %v1970_v3 = vcombine.high %v26_v0, %v30_v1  ;;  %v1969_v4 = vcombine.low %v26_v0, %v30_v1 }
   0x4   :  { %v38_v5 = vld [vmem:[%s3288_s1 + $0x60] sm:$0xff] }
   0x5   :  { %v1978_v6 = vcombine.high %v34_v2, %v38_v5  ;;  %v42_v7 = vld [vmem:[%s3288_s1 + $0x80] sm:$0xff]  ;;  %836 = vmatprep.subr.bf16.mxu1 %v1970_v3  ;;  %v1977_v9 = vcombine.low %v34_v2, %v38_v5  ;;  %v27_v2 = vld [vmem:[%s3288_s1 + $0x8] sm:$0xff] }
   0x6   :  { %v46_v8 = vld [vmem:[%s3288_s1 + $0xa0] sm:$0xff]  ;;  %837 = vmatpush1.bf16.msra.mxu1 %v1969_v4  ;;  %v31_v3 = vld [vmem:[%s3288_s1 + $0x28] sm:$0xff] }
   0x7   :  { %838 = vmatprep.subr.bf16.mxu1 %v1978_v6  ;;  %v1986_v10 = vcombine.high %v42_v7, %v46_v8  ;;  %v50_v11 = vld [vmem:[%s3288_s1 + $0xc0] sm:$0xff]  ;;  %v1985_v13 = vcombine.low %v42_v7, %v46_v8  ;;  %v1972_v5 = vcombine.high %v27_v2, %v31_v3  ;;  %v35_v6 = vld [vmem:[%s3288_s1 + $0x48] sm:$0xff] }
   0x8   :  { %v54_v12 = vld [vmem:[%s3288_s1 + $0xe0] sm:$0xff]  ;;  %v39_v7 = vld [vmem:[%s3288_s1 + $0x68] sm:$0xff] }
   0x9   :  { %v1994_v14 = vcombine.high %v50_v11, %v54_v12  ;;  %v58_v15 = vld [vmem:[%s3288_s1 + $0x100] sm:$0xff]  ;;  %v1993_v19 = vcombine.low %v50_v11, %v54_v12  ;;  %v43_v11 = vld [vmem:[%s3288_s1 + $0x88] sm:$0xff] }
   0xa   :  { %839 = vmatpush1.bf16.msra.mxu1 %v1977_v9  ;;  %v62_v16 = vld [vmem:[%s3288_s1 + $0x120] sm:$0xff]  ;;  %v1971_v9 = vcombine.low %v27_v2, %v31_v3  ;;  %v47_v12 = vld [vmem:[%s3288_s1 + $0xa8] sm:$0xff] }
   0xb   :  { %840 = vmatprep.subr.bf16.mxu1 %v1986_v10  ;;  %v2495_v17 = vld [vmem:[%s3289_s0] sm:$0xff]  ;;  %v2002_v20 = vcombine.high %v58_v15, %v62_v16  ;;  %v2001_v24 = vcombine.low %v58_v15, %v62_v16  ;;  %v1980_v10 = vcombine.high %v35_v6, %v39_v7  ;;  %v51_v15 = vld [vmem:[%s3288_s1 + $0xc8] sm:$0xff] }
   0xc   :  { %v22_v18 = vcombine.high %v2495_v17, %v2495_v17  ;;  %v66_v22 = vld [vmem:[%s3288_s1 + $0x140] sm:$0xff]  ;;  %v2582_v8 = vpack.c.bf16 %v2495_v17, %v2495_v17  ;;  %v55_v16 = vld [vmem:[%s3288_s1 + $0xe8] sm:$0xff]  ;;  %v1987_v17 = vcombine.low %v43_v11, %v47_v12 }
   0xd   :  { %v70_v23 = vld [vmem:[%s3288_s1 + $0x160] sm:$0xff] }
   0xe   :  { %841 = vmatpush1.bf16.msra.mxu1 %v1985_v13  ;;  %v2499_v21 = vpack.c.bf16 %v22_v18, %v22_v18  ;;  %v2010_v25 = vcombine.high %v66_v22, %v70_v23  ;;  %v74_v26 = vld [vmem:[%s3288_s1 + $0x180] sm:$0xff]  ;;  %v2009_v28 = vcombine.low %v66_v22, %v70_v23  ;;  %v1979_v13 = vcombine.low %v35_v6, %v39_v7  ;;  %v143_v6 = vld [vmem:[%s3288_s1 + $0x3a8] sm:$0xff] }
   0xf   :  { %842 = vmatprep.subr.bf16.mxu1 %v1994_v14  ;;  %v78_v27 = vld [vmem:[%s3288_s1 + $0x1a0] sm:$0xff]  ;;  %v1988_v14 = vcombine.high %v43_v11, %v47_v12  ;;  %v1996_v18 = vcombine.high %v51_v15, %v55_v16  ;;  %v1995_v22 = vcombine.low %v51_v15, %v55_v16  ;;  %v147_v12 = vld [vmem:[%s3288_s1 + $0x3c8] sm:$0xff] }
  0x10   :  { %868 = vmatprep.mubr.bf16.mxu1 %v2499_v21  ;;  %v2018_v29 = vcombine.high %v74_v26, %v78_v27  ;;  %v82_v30 = vld [vmem:[%s3288_s1 + $0x1c0] sm:$0xff]  ;;  %v2017_v32 = vcombine.low %v74_v26, %v78_v27 }
  0x11   :  { %v86_v31 = vld [vmem:[%s3288_s1 + $0x1e0] sm:$0xff] }
  0x12   :  { %843 = vmatpush1.bf16.msra.mxu1 %v1993_v19  ;;  %v2026_v33 = vcombine.high %v82_v30, %v86_v31  ;;  %v90_v34 = vld [vmem:[%s3288_s1 + $0x200] sm:$0xff]  ;;  %v2025_v36 = vcombine.low %v82_v30, %v86_v31  ;;  %v59_v19 = vld [vmem:[%s3288_s1 + $0x108] sm:$0xff] }
  0x13   :  { %844 = vmatprep.subr.bf16.mxu1 %v2002_v20  ;;  %v94_v35 = vld [vmem:[%s3288_s1 + $0x220] sm:$0xff]  ;;  %v63_v20 = vld [vmem:[%s3288_s1 + $0x128] sm:$0xff] }
  0x14   :  { %v2034_v37 = vcombine.high %v90_v34, %v94_v35  ;;  %v98_v38 = vld [vmem:[%s3288_s1 + $0x240] sm:$0xff]  ;;  %v2033_v40 = vcombine.low %v90_v34, %v94_v35  ;;  %v2004_v23 = vcombine.high %v59_v19, %v63_v20  ;;  %v2003_v26 = vcombine.low %v59_v19, %v63_v20  ;;  %v32_v19 = vld [vmem:[%s3288_s1 + $0x30] sm:$0xff] }
  0x15   :  { %v102_v39 = vld [vmem:[%s3288_s1 + $0x260] sm:$0xff] }
  0x16   :  { %845 = vmatpush1.bf16.msra.mxu1 %v2001_v24  ;;  %v2042_v41 = vcombine.high %v98_v38, %v102_v39  ;;  %v106_v42 = vld [vmem:[%s3288_s1 + $0x280] sm:$0xff]  ;;  %v2041_v44 = vcombine.low %v98_v38, %v102_v39  ;;  %v67_v24 = vld [vmem:[%s3288_s1 + $0x148] sm:$0xff] }
  0x17   :  { %846 = vmatprep.subr.bf16.mxu1 %v2010_v25  ;;  %v110_v43 = vld [vmem:[%s3288_s1 + $0x2a0] sm:$0xff]  ;;  %v71_v25 = vld [vmem:[%s3288_s1 + $0x168] sm:$0xff] }
  0x18   :  { %v2050_v45 = vcombine.high %v106_v42, %v110_v43  ;;  %v114_v46 = vld [vmem:[%s3288_s1 + $0x2c0] sm:$0xff]  ;;  %v2049_v48 = vcombine.low %v106_v42, %v110_v43  ;;  %v2012_v27 = vcombine.high %v67_v24, %v71_v25  ;;  %v2011_v30 = vcombine.low %v67_v24, %v71_v25  ;;  %v99_v39 = vld [vmem:[%s3288_s1 + $0x248] sm:$0xff]  ;;  %v36_v25 = vld [vmem:[%s3288_s1 + $0x50] sm:$0xff] }
  0x19   :  { %v118_v47 = vld [vmem:[%s3288_s1 + $0x2e0] sm:$0xff] }
  0x1a   :  { %847 = vmatpush1.bf16.msra.mxu1 %v2009_v28  ;;  %v2058_v49 = vcombine.high %v114_v46, %v118_v47  ;;  %v122_v50 = vld [vmem:[%s3288_s1 + $0x300] sm:$0xff]  ;;  %v2057_v52 = vcombine.low %v114_v46, %v118_v47  ;;  %v75_v28 = vld [vmem:[%s3288_s1 + $0x188] sm:$0xff] }
  0x1b   :  { %848 = vmatprep.subr.bf16.mxu1 %v2018_v29  ;;  %v126_v51 = vld [vmem:[%s3288_s1 + $0x320] sm:$0xff]  ;;  %v79_v29 = vld [vmem:[%s3288_s1 + $0x1a8] sm:$0xff] }
  0x1c   :  { %v2066_v53 = vcombine.high %v122_v50, %v126_v51  ;;  %v130_v54 = vld [vmem:[%s3288_s1 + $0x340] sm:$0xff]  ;;  %v2065_v56 = vcombine.low %v122_v50, %v126_v51  ;;  %v2020_v31 = vcombine.high %v75_v28, %v79_v29  ;;  %v2019_v34 = vcombine.low %v75_v28, %v79_v29  ;;  %v111_v46 = vld [vmem:[%s3288_s1 + $0x2a8] sm:$0xff] }
  0x1d   :  { %v134_v55 = vld [vmem:[%s3288_s1 + $0x360] sm:$0xff]  ;;  %v115_v51 = vld [vmem:[%s3288_s1 + $0x2c8] sm:$0xff] }
  0x1e   :  { %849 = vmatpush1.bf16.msra.mxu1 %v2017_v32  ;;  %v2074_v57 = vcombine.high %v130_v54, %v134_v55  ;;  %v138_v58 = vld [vmem:[%s3288_s1 + $0x380] sm:$0xff]  ;;  %v2073_v60 = vcombine.low %v130_v54, %v134_v55  ;;  %v83_v32 = vld [vmem:[%s3288_s1 + $0x1c8] sm:$0xff] }
  0x1f   :  { %850 = vmatprep.subr.bf16.mxu1 %v2026_v33  ;;  %v142_v59 = vld [vmem:[%s3288_s1 + $0x3a0] sm:$0xff]  ;;  %v87_v33 = vld [vmem:[%s3288_s1 + $0x1e8] sm:$0xff] }
  0x20   :  { %v2082_v61 = vcombine.high %v138_v58, %v142_v59  ;;  %v146_v62 = vld [vmem:[%s3288_s1 + $0x3c0] sm:$0xff]  ;;  %v2081_v0 = vcombine.low %v138_v58, %v142_v59  ;;  %v2028_v35 = vcombine.high %v83_v32, %v87_v33  ;;  %v2027_v38 = vcombine.low %v83_v32, %v87_v33  ;;  %v127_v58 = vld [vmem:[%s3288_s1 + $0x328] sm:$0xff]  ;;  %v48_v32 = vld [vmem:[%s3288_s1 + $0xb0] sm:$0xff] }
  0x21   :  { %v150_v63 = vld [vmem:[%s3288_s1 + $0x3e0] sm:$0xff] }
  0x22   :  { %851 = vmatpush1.bf16.msra.mxu1 %v2025_v36  ;;  %v2090_v1 = vcombine.high %v146_v62, %v150_v63  ;;  %v2089_v4 = vcombine.low %v146_v62, %v150_v63  ;;  %v91_v36 = vld [vmem:[%s3288_s1 + $0x208] sm:$0xff] }
  0x23   :  { %852 = vmatprep.subr.bf16.mxu1 %v2034_v37  ;;  %v95_v37 = vld [vmem:[%s3288_s1 + $0x228] sm:$0xff] }
  0x24   :  { %v2240_v42 = vld [vmem:[%s3290_s3 + $0x4] ss:$8 sps:$4 sm:$0xff]   ;;  %v2242_v43 = vld [vmem:[%s3290_s3] ss:$8 sps:$4 sm:$0xff]  }
  0x25   :  { %1796 = vmatprep.subr.bf16.mxu0 %v2240_v42  ;;  %v2246_v54 = vld [vmem:[%s3290_s3 + $0x24] ss:$8 sps:$4 sm:$0xff]   ;;  %v2248_v55 = vld [vmem:[%s3290_s3 + $0x20] ss:$8 sps:$4 sm:$0xff]   ;;  %v2273_v42 = vld [vmem:[%s3290_s3 + $0xb4] ss:$8 sps:$4 sm:$0xff]  }
  0x26   :  { %853 = vmatpush1.bf16.msra.mxu1 %v2033_v40  ;;  %v103_v40 = vld [vmem:[%s3288_s1 + $0x268] sm:$0xff]  ;;  %1797 = vmatpush1.bf16.msra.mxu0 %v2242_v43  ;;  %v2275_v43 = vld [vmem:[%s3290_s3 + $0xb0] ss:$8 sps:$4 sm:$0xff]  }
  0x27   :  { %854 = vmatprep.subr.bf16.mxu1 %v2042_v41  ;;  %v2036_v41 = vcombine.high %v91_v36, %v95_v37  ;;  %v2044_v47 = vcombine.high %v99_v39, %v103_v40  ;;  %v2043_v50 = vcombine.low %v99_v39, %v103_v40  ;;  %v131_v63 = vld [vmem:[%s3288_s1 + $0x348] sm:$0xff]  ;;  %v56_v40 = vld [vmem:[%s3288_s1 + $0xf0] sm:$0xff] }
  0x28   :  { %v2252_v2 = vld [vmem:[%s3290_s3 + $0x44] ss:$8 sps:$4 sm:$0xff]   ;;  %v2254_v3 = vld [vmem:[%s3290_s3 + $0x40] ss:$8 sps:$4 sm:$0xff]  }
  0x29   :  { %v2258_v15 = vld [vmem:[%s3290_s3 + $0x64] ss:$8 sps:$4 sm:$0xff]   ;;  %v2260_v16 = vld [vmem:[%s3290_s3 + $0x60] ss:$8 sps:$4 sm:$0xff]  }
  0x2a   :  { %855 = vmatpush1.bf16.msra.mxu1 %v2041_v44  ;;  %v2035_v44 = vcombine.low %v91_v36, %v95_v37  ;;  %v2264_v28 = vld [vmem:[%s3290_s3 + $0x84] ss:$8 sps:$4 sm:$0xff]   ;;  %v2266_v29 = vld [vmem:[%s3290_s3 + $0x80] ss:$8 sps:$4 sm:$0xff]  }
  0x2b   :  { %856 = vmatprep.subr.bf16.mxu1 %v2050_v45  ;;  %v107_v45 = vld [vmem:[%s3288_s1 + $0x288] sm:$0xff] }
  0x2c   :  { %v2270_v36 = vld [vmem:[%s3290_s3 + $0xa4] ss:$8 sps:$4 sm:$0xff]  }
  0x2e   :  { %857 = vmatpush1.bf16.msra.mxu1 %v2049_v48  ;;  %v2243_v48 = vld [vmem:[%s3290_s3 + $0x14] ss:$8 sps:$4 sm:$0xff]  }
  0x2f   :  { %858 = vmatprep.subr.bf16.mxu1 %v2058_v49  ;;  %v2245_v49 = vld [vmem:[%s3290_s3 + $0x10] ss:$8 sps:$4 sm:$0xff]   ;;  %1798 = vmatprep.subr.bf16.mxu0 %v2243_v48 }
  0x30   :  { %1799 = vmatpush1.bf16.msra.mxu0 %v2245_v49  ;;  %v2278_v49 = vld [vmem:[%s3290_s3 + $0xc0] ss:$8 sps:$4 sm:$0xff]  }
  0x31   :  { %1800 = vmatprep.subr.bf16.mxu0 %v2246_v54 }
  0x32   :  { %859 = vmatpush1.bf16.msra.mxu1 %v2057_v52  ;;  %v119_v52 = vld [vmem:[%s3288_s1 + $0x2e8] sm:$0xff] }
  0x33   :  { %860 = vmatprep.subr.bf16.mxu1 %v2066_v53  ;;  %v2052_v53 = vcombine.high %v107_v45, %v111_v46  ;;  %v2060_v59 = vcombine.high %v115_v51, %v119_v52  ;;  %v2059_v62 = vcombine.low %v115_v51, %v119_v52  ;;  %v68_v51 = vld [vmem:[%s3288_s1 + $0x150] sm:$0xff] }
  0x34   :  { %1801 = vmatpush1.bf16.msra.mxu0 %v2248_v55  ;;  %v72_v52 = vld [vmem:[%s3288_s1 + $0x170] sm:$0xff] }
  0x35   :  { %v2281_v55 = vld [vmem:[%s3290_s3 + $0xd0] ss:$8 sps:$4 sm:$0xff]  }
  0x36   :  { %861 = vmatpush1.bf16.msra.mxu1 %v2065_v56  ;;  %v2051_v56 = vcombine.low %v107_v45, %v111_v46  ;;  %v60_v45 = vld [vmem:[%s3288_s1 + $0x110] sm:$0xff] }
  0x37   :  { %862 = vmatprep.subr.bf16.mxu1 %v2074_v57  ;;  %v123_v57 = vld [vmem:[%s3288_s1 + $0x308] sm:$0xff]  ;;  %v64_v46 = vld [vmem:[%s3288_s1 + $0x130] sm:$0xff] }
  0x38   :  { %v2006_v54 = vcombine.high %v60_v45, %v64_v46 }
  0x3a   :  { %863 = vmatpush1.bf16.msra.mxu1 %v2073_v60  ;;  %v2249_v60 = vld [vmem:[%s3290_s3 + $0x34] ss:$8 sps:$4 sm:$0xff]  }
  0x3b   :  { %864 = vmatprep.subr.bf16.mxu1 %v2082_v61  ;;  %v2251_v61 = vld [vmem:[%s3290_s3 + $0x30] ss:$8 sps:$4 sm:$0xff]   ;;  %1802 = vmatprep.subr.bf16.mxu0 %v2249_v60  ;;  %v2013_v60 = vcombine.low %v68_v51, %v72_v52 }
  0x3c   :  { %1803 = vmatpush1.bf16.msra.mxu0 %v2251_v61  ;;  %v84_v61 = vld [vmem:[%s3288_s1 + $0x1d0] sm:$0xff] }
  0x3d   :  { %1804 = vmatprep.subr.bf16.mxu0 %v2252_v2 }
  0x3e   :  { %865 = vmatpush1.bf16.msra.mxu1 %v2081_v0  ;;  %v135_v0 = vld [vmem:[%s3288_s1 + $0x368] sm:$0xff] }
  0x3f   :  { %866 = vmatprep.subr.bf16.mxu1 %v2090_v1  ;;  %v2068_v1 = vcombine.high %v123_v57, %v127_v58  ;;  %v2076_v7 = vcombine.high %v131_v63, %v135_v0  ;;  %v2075_v11 = vcombine.low %v131_v63, %v135_v0  ;;  %v2282_v0 = vld [vmem:[%s3290_s3 + $0xe4] ss:$8 sps:$4 sm:$0xff]  }
  0x40   :  { %1805 = vmatpush1.bf16.msra.mxu0 %v2254_v3 }
  0x42   :  { %867 = vmatpush1.bf16.msra.mxu1 %v2089_v4  ;;  %v2067_v4 = vcombine.low %v123_v57, %v127_v58  ;;  %v76_v57 = vld [vmem:[%s3288_s1 + $0x190] sm:$0xff] }
  0x43   :  { %877 = vmatprep.subr.bf16.mxu1 %v1972_v5  ;;  %v139_v5 = vld [vmem:[%s3288_s1 + $0x388] sm:$0xff]  ;;  %v80_v58 = vld [vmem:[%s3288_s1 + $0x1b0] sm:$0xff] }
  0x44   :  { %v2022_v63 = vcombine.high %v76_v57, %v80_v58  ;;  %v2021_v2 = vcombine.low %v76_v57, %v80_v58  ;;  %v61_v57 = vld [vmem:[%s3288_s1 + $0x118] sm:$0xff] }
  0x45   :  { %869 = vmatmul.mubr.bf16.vlgmr.msra.gmra.mrb[0].mxu1 %v2582_v8 }
  0x46   :  { %878 = vmatpush1.bf16.msra.mxu1 %v1971_v9  ;;  %909 = vmatprep.mubr.bf16.mxu1 %v2499_v21  ;;  %v2255_v9 = vld [vmem:[%s3290_s3 + $0x54] ss:$8 sps:$4 sm:$0xff]  }
  0x47   :  { %879 = vmatprep.subr.bf16.mxu1 %v1980_v10  ;;  %v2257_v10 = vld [vmem:[%s3290_s3 + $0x50] ss:$8 sps:$4 sm:$0xff]   ;;  %1806 = vmatprep.subr.bf16.mxu0 %v2255_v9 }
  0x48   :  { %1807 = vmatpush1.bf16.msra.mxu0 %v2257_v10 }
  0x49   :  { %1808 = vmatprep.subr.bf16.mxu0 %v2258_v15 }
  0x4a   :  { %880 = vmatpush1.bf16.msra.mxu1 %v1979_v13  ;;  %v151_v13 = vld [vmem:[%s3288_s1 + $0x3e8] sm:$0xff] }
  0x4b   :  { %881 = vmatprep.subr.bf16.mxu1 %v1988_v14  ;;  %v2084_v14 = vcombine.high %v139_v5, %v143_v6  ;;  %v2092_v20 = vcombine.high %v147_v12, %v151_v13  ;;  %v2091_v24 = vcombine.low %v147_v12, %v151_v13  ;;  %v100_v12 = vld [vmem:[%s3288_s1 + $0x250] sm:$0xff] }
  0x4c   :  { %1809 = vmatpush1.bf16.msra.mxu0 %v2260_v16  ;;  %v104_v13 = vld [vmem:[%s3288_s1 + $0x270] sm:$0xff] }
  0x4d   :  { %v2046_v15 = vcombine.high %v100_v12, %v104_v13  ;;  %v108_v16 = vld [vmem:[%s3288_s1 + $0x290] sm:$0xff] }
  0x4e   :  { %882 = vmatpush1.bf16.msra.mxu1 %v1987_v17  ;;  %v2083_v17 = vcombine.low %v139_v5, %v143_v6  ;;  %v92_v5 = vld [vmem:[%s3288_s1 + $0x210] sm:$0xff] }
  0x4f   :  { %883 = vmatprep.subr.bf16.mxu1 %v1996_v18  ;;  %v28_v18 = vld [vmem:[%s3288_s1 + $0x10] sm:$0xff] }
  0x50   :  { %v96_v6 = vld [vmem:[%s3288_s1 + $0x230] sm:$0xff] }
  0x51   :  { %v2038_v10 = vcombine.high %v92_v5, %v96_v6 }
  0x52   :  { %884 = vmatpush1.bf16.msra.mxu1 %v1995_v22  ;;  %v2261_v22 = vld [vmem:[%s3290_s3 + $0x74] ss:$8 sps:$4 sm:$0xff]  }
  0x53   :  { %885 = vmatprep.subr.bf16.mxu1 %v2004_v23  ;;  %v2263_v23 = vld [vmem:[%s3290_s3 + $0x70] ss:$8 sps:$4 sm:$0xff]   ;;  %1810 = vmatprep.subr.bf16.mxu0 %v2261_v22 }
  0x54   :  { %1811 = vmatpush1.bf16.msra.mxu0 %v2263_v23  ;;  %v120_v22 = vld [vmem:[%s3288_s1 + $0x2f0] sm:$0xff] }
  0x55   :  { %1812 = vmatprep.subr.bf16.mxu0 %v2264_v28 }
  0x56   :  { %886 = vmatpush1.bf16.msra.mxu1 %v2003_v26  ;;  %v40_v26 = vld [vmem:[%s3288_s1 + $0x70] sm:$0xff] }
  0x57   :  { %887 = vmatprep.subr.bf16.mxu1 %v2012_v27  ;;  %v1974_v27 = vcombine.high %v28_v18, %v32_v19  ;;  %v1982_v33 = vcombine.high %v36_v25, %v40_v26  ;;  %v1981_v37 = vcombine.low %v36_v25, %v40_v26  ;;  %v124_v25 = vld [vmem:[%s3288_s1 + $0x310] sm:$0xff] }
  0x58   :  { %1813 = vmatpush1.bf16.msra.mxu0 %v2266_v29  ;;  %v128_v26 = vld [vmem:[%s3288_s1 + $0x330] sm:$0xff] }
  0x59   :  { %v2070_v28 = vcombine.high %v124_v25, %v128_v26  ;;  %v132_v29 = vld [vmem:[%s3288_s1 + $0x350] sm:$0xff] }
  0x5a   :  { %888 = vmatpush1.bf16.msra.mxu1 %v2011_v30  ;;  %v1973_v30 = vcombine.low %v28_v18, %v32_v19  ;;  %v2045_v18 = vcombine.low %v100_v12, %v104_v13  ;;  %v101_v13 = vld [vmem:[%s3288_s1 + $0x258] sm:$0xff] }
  0x5b   :  { %889 = vmatprep.subr.bf16.mxu1 %v2020_v31  ;;  %v44_v31 = vld [vmem:[%s3288_s1 + $0x90] sm:$0xff] }
  0x5c   :  { %v1990_v39 = vcombine.high %v44_v31, %v48_v32 }
  0x5e   :  { %890 = vmatpush1.bf16.msra.mxu1 %v2019_v34  ;;  %v2267_v34 = vld [vmem:[%s3290_s3 + $0x94] ss:$8 sps:$4 sm:$0xff]  }
  0x5f   :  { %891 = vmatprep.subr.bf16.mxu1 %v2028_v35  ;;  %v2269_v35 = vld [vmem:[%s3290_s3 + $0x90] ss:$8 sps:$4 sm:$0xff]   ;;  %1814 = vmatprep.subr.bf16.mxu0 %v2267_v34 }
  0x60   :  { %1815 = vmatpush1.bf16.msra.mxu0 %v2269_v35  ;;  %v144_v34 = vld [vmem:[%s3288_s1 + $0x3b0] sm:$0xff] }
  0x61   :  { %1816 = vmatprep.subr.bf16.mxu0 %v2270_v36 }
  0x62   :  { %892 = vmatpush1.bf16.msra.mxu1 %v2027_v38  ;;  %v52_v38 = vld [vmem:[%s3288_s1 + $0xd0] sm:$0xff] }
  0x63   :  { %893 = vmatprep.subr.bf16.mxu1 %v2036_v41  ;;  %v2272_v41 = vld [vmem:[%s3290_s3 + $0xa0] ss:$8 sps:$4 sm:$0xff]   ;;  %v1998_v48 = vcombine.high %v52_v38, %v56_v40 }
  0x64   :  { %1817 = vmatpush1.bf16.msra.mxu0 %v2272_v41  ;;  %v29_v41 = vld [vmem:[%s3288_s1 + $0x18] sm:$0xff] }
  0x65   :  { %1818 = vmatprep.subr.bf16.mxu0 %v2273_v42  ;;  %v33_v42 = vld [vmem:[%s3288_s1 + $0x38] sm:$0xff] }
  0x66   :  { %894 = vmatpush1.bf16.msra.mxu1 %v2035_v44  ;;  %v1989_v44 = vcombine.low %v44_v31, %v48_v32  ;;  %v2069_v31 = vcombine.low %v124_v25, %v128_v26  ;;  %v125_v26 = vld [vmem:[%s3288_s1 + $0x318] sm:$0xff] }
  0x67   :  { %895 = vmatprep.subr.bf16.mxu1 %v2044_v47  ;;  %v2276_v47 = vld [vmem:[%s3290_s3 + $0xc4] ss:$8 sps:$4 sm:$0xff]  }
  0x68   :  { %1819 = vmatpush1.bf16.msra.mxu0 %v2275_v43 }
  0x69   :  { %1820 = vmatprep.subr.bf16.mxu0 %v2276_v47  ;;  %v1975_v47 = vcombine.low %v29_v41, %v33_v42 }
  0x6a   :  { %896 = vmatpush1.bf16.msra.mxu1 %v2043_v50  ;;  %v1997_v50 = vcombine.low %v52_v38, %v56_v40  ;;  %v152_v38 = vld [vmem:[%s3288_s1 + $0x3f0] sm:$0xff] }
  0x6b   :  { %897 = vmatprep.subr.bf16.mxu1 %v2052_v53  ;;  %v2279_v53 = vld [vmem:[%s3290_s3 + $0xd4] ss:$8 sps:$4 sm:$0xff]  }
  0x6c   :  { %1821 = vmatpush1.bf16.msra.mxu0 %v2278_v49  ;;  %v45_v49 = vld [vmem:[%s3288_s1 + $0x98] sm:$0xff] }
  0x6d   :  { %1822 = vmatprep.subr.bf16.mxu0 %v2279_v53  ;;  %v53_v53 = vld [vmem:[%s3288_s1 + $0xd8] sm:$0xff] }
  0x6e   :  { %898 = vmatpush1.bf16.msra.mxu1 %v2051_v56  ;;  %v2005_v56 = vcombine.low %v60_v45, %v64_v46  ;;  %v37_v45 = vld [vmem:[%s3288_s1 + $0x58] sm:$0xff] }
  0x6f   :  { %899 = vmatprep.subr.bf16.mxu1 %v2060_v59  ;;  %v2014_v59 = vcombine.high %v68_v51, %v72_v52  ;;  %v41_v46 = vld [vmem:[%s3288_s1 + $0x78] sm:$0xff] }
  0x70   :  { %1823 = vmatpush1.bf16.msra.mxu0 %v2281_v55  ;;  %v1983_v51 = vcombine.low %v37_v45, %v41_v46 }
  0x71   :  { %1824 = vmatprep.subr.bf16.mxu0 %v2282_v0  ;;  %v77_v0 = vld [vmem:[%s3288_s1 + $0x198] sm:$0xff] }
  0x72   :  { %900 = vmatpush1.bf16.msra.mxu1 %v2059_v62  ;;  %v88_v62 = vld [vmem:[%s3288_s1 + $0x1f0] sm:$0xff] }
  0x73   :  { %901 = vmatprep.subr.bf16.mxu1 %v2068_v1  ;;  %v2284_v1 = vld [vmem:[%s3290_s3 + $0xe0] ss:$8 sps:$4 sm:$0xff]   ;;  %v2030_v3 = vcombine.high %v84_v61, %v88_v62  ;;  %v2029_v9 = vcombine.low %v84_v61, %v88_v62  ;;  %v73_v61 = vld [vmem:[%s3288_s1 + $0x178] sm:$0xff] }
  0x74   :  { %1825 = vmatpush1.bf16.msra.mxu0 %v2284_v1  ;;  %v81_v1 = vld [vmem:[%s3288_s1 + $0x1b8] sm:$0xff] }
  0x76   :  { %902 = vmatpush1.bf16.msra.mxu1 %v2067_v4  ;;  %v2285_v4 = vld [vmem:[%s3290_s3 + $0xf4] ss:$8 sps:$4 sm:$0xff]  }
  0x77   :  { %903 = vmatprep.subr.bf16.mxu1 %v2076_v7  ;;  %v2287_v7 = vld [vmem:[%s3290_s3 + $0xf0] ss:$8 sps:$4 sm:$0xff]   ;;  %1826 = vmatprep.subr.bf16.mxu0 %v2285_v4 }
  0x78   :  { %1827 = vmatpush1.bf16.msra.mxu0 %v2287_v7  ;;  %v85_v4 = vld [vmem:[%s3288_s1 + $0x1d8] sm:$0xff] }
  0x7a   :  { %904 = vmatpush1.bf16.msra.mxu1 %v2075_v11  ;;  %v2290_v11 = vld [vmem:[%s3290_s3 + $0x104] ss:$8 sps:$4 sm:$0xff]  }
  0x7b   :  { %905 = vmatprep.subr.bf16.mxu1 %v2084_v14  ;;  %1837 = vmatprep.subr.bf16.mxu0 %v2290_v11  ;;  %v2037_v14 = vcombine.low %v92_v5, %v96_v6  ;;  %v89_v5 = vld [vmem:[%s3288_s1 + $0x1f8] sm:$0xff]  ;;  %v2023_v6 = vcombine.low %v77_v0, %v81_v1 }
  0x7c   :  { %v2032_v7 = vcombine.high %v85_v4, %v89_v5  ;;  %v2031_v11 = vcombine.low %v85_v4, %v89_v5  ;;  %v2303_v4 = vld [vmem:[%s3290_s3 + $0x150] ss:$8 sps:$4 sm:$0xff]   ;;  %v2308_v5 = vld [vmem:[%s3290_s3 + $0x164] ss:$8 sps:$4 sm:$0xff]  }
  0x7e   :  { %906 = vmatpush1.bf16.msra.mxu1 %v2083_v17  ;;  %v112_v17 = vld [vmem:[%s3288_s1 + $0x2b0] sm:$0xff] }
  0x7f   :  { %907 = vmatprep.subr.bf16.mxu1 %v2092_v20  ;;  %v2054_v19 = vcombine.high %v108_v16, %v112_v17  ;;  %v116_v20 = vld [vmem:[%s3288_s1 + $0x2d0] sm:$0xff]  ;;  %v2053_v23 = vcombine.low %v108_v16, %v112_v17  ;;  %v109_v17 = vld [vmem:[%s3288_s1 + $0x298] sm:$0xff] }
  0x82   :  { %908 = vmatpush1.bf16.msra.mxu1 %v2091_v24  ;;  %v2062_v24 = vcombine.high %v116_v20, %v120_v22 }
  0x83   :  { %918 = vmatprep.subr.bf16.mxu1 %v1974_v27  ;;  %v2061_v27 = vcombine.low %v116_v20, %v120_v22  ;;  %v117_v22 = vld [vmem:[%s3288_s1 + $0x2d8] sm:$0xff] }
  0x85   :  { %910 = vmatmul.mubr.bf16.vlgmr.msra.gmra.mrb[4].mxu1 %v2582_v8 }
  0x86   :  { %919 = vmatpush1.bf16.msra.mxu1 %v1973_v30  ;;  %950 = vmatprep.mubr.bf16.mxu1 %v2499_v21  ;;  %v136_v30 = vld [vmem:[%s3288_s1 + $0x370] sm:$0xff] }
  0x87   :  { %920 = vmatprep.subr.bf16.mxu1 %v1982_v33  ;;  %v2078_v32 = vcombine.high %v132_v29, %v136_v30  ;;  %v140_v33 = vld [vmem:[%s3288_s1 + $0x390] sm:$0xff]  ;;  %v2077_v35 = vcombine.low %v132_v29, %v136_v30  ;;  %v133_v30 = vld [vmem:[%s3288_s1 + $0x358] sm:$0xff] }
  0x88   :  { %v2086_v36 = vcombine.high %v140_v33, %v144_v34 }
  0x8a   :  { %921 = vmatpush1.bf16.msra.mxu1 %v1981_v37  ;;  %v148_v37 = vld [vmem:[%s3288_s1 + $0x3d0] sm:$0xff] }
  0x8b   :  { %922 = vmatprep.subr.bf16.mxu1 %v1990_v39  ;;  %v2085_v39 = vcombine.low %v140_v33, %v144_v34  ;;  %v2094_v40 = vcombine.high %v148_v37, %v152_v38  ;;  %v2093_v43 = vcombine.low %v148_v37, %v152_v38  ;;  %v141_v34 = vld [vmem:[%s3288_s1 + $0x398] sm:$0xff] }
  0x8c   :  { %v149_v38 = vld [vmem:[%s3288_s1 + $0x3d8] sm:$0xff] }
  0x8e   :  { %923 = vmatpush1.bf16.msra.mxu1 %v1989_v44  ;;  %v1976_v44 = vcombine.high %v29_v41, %v33_v42 }
  0x8f   :  { %924 = vmatprep.subr.bf16.mxu1 %v1998_v48  ;;  %v1984_v48 = vcombine.high %v37_v45, %v41_v46  ;;  %v2972_v46 = vld [vmem:[%s3291_s2] sm:$0xff] }
  0x92   :  { %925 = vmatpush1.bf16.msra.mxu1 %v1997_v50  ;;  %v49_v50 = vld [vmem:[%s3288_s1 + $0xb8] sm:$0xff] }
  0x93   :  { %926 = vmatprep.subr.bf16.mxu1 %v2006_v54  ;;  %v1992_v52 = vcombine.high %v45_v49, %v49_v50  ;;  %v57_v54 = vld [vmem:[%s3288_s1 + $0xf8] sm:$0xff]  ;;  %v1991_v55 = vcombine.low %v45_v49, %v49_v50 }
  0x94   :  { %v1999_v58 = vcombine.low %v53_v53, %v57_v54 }
  0x96   :  { %927 = vmatpush1.bf16.msra.mxu1 %v2005_v56  ;;  %v2000_v56 = vcombine.high %v53_v53, %v57_v54 }
  0x97   :  { %928 = vmatprep.subr.bf16.mxu1 %v2014_v59 }
  0x9a   :  { %929 = vmatpush1.bf16.msra.mxu1 %v2013_v60  ;;  %v69_v60 = vld [vmem:[%s3288_s1 + $0x158] sm:$0xff] }
  0x9b   :  { %930 = vmatprep.subr.bf16.mxu1 %v2022_v63  ;;  %v2016_v63 = vcombine.high %v69_v60, %v73_v61 }
  0x9e   :  { %931 = vmatpush1.bf16.msra.mxu1 %v2021_v2  ;;  %v2015_v2 = vcombine.low %v69_v60, %v73_v61  ;;  %v2291_v60 = vld [vmem:[%s3290_s3 + $0x110] ss:$8 sps:$4 sm:$0xff]   ;;  %v2296_v61 = vld [vmem:[%s3290_s3 + $0x124] ss:$8 sps:$4 sm:$0xff]  }
  0x9f   :  { %932 = vmatprep.subr.bf16.mxu1 %v2030_v3  ;;  %v2024_v3 = vcombine.high %v77_v0, %v81_v1  ;;  %v2297_v0 = vld [vmem:[%s3290_s3 + $0x130] ss:$8 sps:$4 sm:$0xff]   ;;  %v2302_v1 = vld [vmem:[%s3290_s3 + $0x144] ss:$8 sps:$4 sm:$0xff]  }
  0xa2   :  { %933 = vmatpush1.bf16.msra.mxu1 %v2029_v9  ;;  %v93_v9 = vld [vmem:[%s3288_s1 + $0x218] sm:$0xff] }
  0xa3   :  { %934 = vmatprep.subr.bf16.mxu1 %v2038_v10  ;;  %v97_v10 = vld [vmem:[%s3288_s1 + $0x238] sm:$0xff] }
  0xa4   :  { %v2040_v12 = vcombine.high %v93_v9, %v97_v10 }
  0xa6   :  { %935 = vmatpush1.bf16.msra.mxu1 %v2037_v14  ;;  %v105_v14 = vld [vmem:[%s3288_s1 + $0x278] sm:$0xff] }
  0xa7   :  { %936 = vmatprep.subr.bf16.mxu1 %v2046_v15  ;;  %v2039_v15 = vcombine.low %v93_v9, %v97_v10  ;;  %v2048_v16 = vcombine.high %v101_v13, %v105_v14  ;;  %v2309_v9 = vld [vmem:[%s3290_s3 + $0x170] ss:$8 sps:$4 sm:$0xff]   ;;  %v2314_v10 = vld [vmem:[%s3290_s3 + $0x184] ss:$8 sps:$4 sm:$0xff]  }
  0xaa   :  { %937 = vmatpush1.bf16.msra.mxu1 %v2045_v18  ;;  %v113_v18 = vld [vmem:[%s3288_s1 + $0x2b8] sm:$0xff] }
  0xab   :  { %938 = vmatprep.subr.bf16.mxu1 %v2054_v19  ;;  %v2047_v19 = vcombine.low %v101_v13, %v105_v14  ;;  %v2056_v20 = vcombine.high %v109_v17, %v113_v18  ;;  %v2315_v13 = vld [vmem:[%s3290_s3 + $0x190] ss:$8 sps:$4 sm:$0xff]   ;;  %v2320_v14 = vld [vmem:[%s3290_s3 + $0x1a4] ss:$8 sps:$4 sm:$0xff]  }
  0xae   :  { %939 = vmatpush1.bf16.msra.mxu1 %v2053_v23  ;;  %v121_v23 = vld [vmem:[%s3288_s1 + $0x2f8] sm:$0xff] }
  0xaf   :  { %940 = vmatprep.subr.bf16.mxu1 %v2062_v24  ;;  %v2055_v24 = vcombine.low %v109_v17, %v113_v18  ;;  %v2064_v25 = vcombine.high %v117_v22, %v121_v23  ;;  %v2321_v17 = vld [vmem:[%s3290_s3 + $0x1b0] ss:$8 sps:$4 sm:$0xff]   ;;  %v2326_v18 = vld [vmem:[%s3290_s3 + $0x1c4] ss:$8 sps:$4 sm:$0xff]  }
  0xb2   :  { %941 = vmatpush1.bf16.msra.mxu1 %v2061_v27  ;;  %v129_v27 = vld [vmem:[%s3288_s1 + $0x338] sm:$0xff] }
  0xb3   :  { %942 = vmatprep.subr.bf16.mxu1 %v2070_v28  ;;  %v2063_v28 = vcombine.low %v117_v22, %v121_v23  ;;  %v2072_v29 = vcombine.high %v125_v26, %v129_v27  ;;  %v2327_v23 = vld [vmem:[%s3290_s3 + $0x1d0] ss:$8 sps:$4 sm:$0xff]  }
  0xb6   :  { %943 = vmatpush1.bf16.msra.mxu1 %v2069_v31  ;;  %v137_v31 = vld [vmem:[%s3288_s1 + $0x378] sm:$0xff] }
  0xb7   :  { %944 = vmatprep.subr.bf16.mxu1 %v2078_v32  ;;  %v2071_v32 = vcombine.low %v125_v26, %v129_v27  ;;  %v2080_v33 = vcombine.high %v133_v30, %v137_v31 }
  0xba   :  { %945 = vmatpush1.bf16.msra.mxu1 %v2077_v35  ;;  %v145_v35 = vld [vmem:[%s3288_s1 + $0x3b8] sm:$0xff] }
  0xbb   :  { %946 = vmatprep.subr.bf16.mxu1 %v2086_v36  ;;  %v2079_v36 = vcombine.low %v133_v30, %v137_v31  ;;  %v2088_v37 = vcombine.high %v141_v34, %v145_v35 }
  0xbe   :  { %947 = vmatpush1.bf16.msra.mxu1 %v2085_v39  ;;  %v153_v39 = vld [vmem:[%s3288_s1 + $0x3f8] sm:$0xff] }
  0xbf   :  { %948 = vmatprep.subr.bf16.mxu1 %v2094_v40  ;;  %v2087_v40 = vcombine.low %v141_v34, %v145_v35  ;;  %v2096_v41 = vcombine.high %v149_v38, %v153_v39  ;;  %v2095_v42 = vcombine.low %v149_v38, %v153_v39  ;;  %v2333_v35 = vld [vmem:[%s3290_s3 + $0x1f0] ss:$8 sps:$4 sm:$0xff]   ;;  %v2338_v38 = vld [vmem:[%s3290_s3 + $0x204] ss:$8 sps:$4 sm:$0xff]  }
  0xc2   :  { %949 = vmatpush1.bf16.msra.mxu1 %v2093_v43  ;;  %v156_v43 = vlaneseq }
  0xc3   :  { %959 = vmatprep.subr.bf16.mxu1 %v1976_v44 }
  0xc4   :  { %v2966_v44 = vshrl.u32 %v156_v43, 7  ;;  %v2341_v43 = vld [vmem:[%s3290_s3 + $0x214] ss:$8 sps:$4 sm:$0xff]  }
  0xc5   :  { %951 = vmatmul.mubr.bf16.vlgmr.msra.gmra.mrb[8].mxu1 %v2582_v8 }
  0xc6   :  { %960 = vmatpush1.bf16.msra.mxu1 %v1975_v47  ;;  %991 = vmatprep.mubr.bf16.mxu1 %v2499_v21  ;;  %v65_v21 = vld [vmem:[%s3288_s1 + $0x138] sm:$0xff]  ;;  %v158_v45 = vsub.s32 0, %v2966_v44  ;;  %v162_v47 = vsub.s32 1, %v2966_v44  ;;  %v166_v22 = vsub.s32 2, %v2966_v44 }
  0xc7   :  { %961 = vmatprep.subr.bf16.mxu1 %v1984_v48  ;;  %v2008_v59 = vcombine.high %v61_v57, %v65_v21  ;;  %v2007_v62 = vcombine.low %v61_v57, %v65_v21 }
  0xc8   :  { %v159_v48 = vrot.slane %v2972_v46, %v158_v45  ;;  %v167_v26 = vrot.slane %v2972_v46, %v166_v22 }
  0xca   :  { %962 = vmatpush1.bf16.msra.mxu1 %v1983_v51 }
  0xcb   :  { %963 = vmatprep.subr.bf16.mxu1 %v1992_v52 }
  0xce   :  { %964 = vmatpush1.bf16.msra.mxu1 %v1991_v55 }
  0xcf   :  { %965 = vmatprep.subr.bf16.mxu1 %v2000_v56 }
  0xd2   :  { %966 = vmatpush1.bf16.msra.mxu1 %v1999_v58  ;;  %v2288_v58 = vld [vmem:[%s3290_s3 + $0x100] ss:$8 sps:$4 sm:$0xff]  }
  0xd3   :  { %967 = vmatprep.subr.bf16.mxu1 %v2008_v59  ;;  %v2293_v59 = vld [vmem:[%s3290_s3 + $0x114] ss:$8 sps:$4 sm:$0xff]  }
  0xd6   :  { %968 = vmatpush1.bf16.msra.mxu1 %v2007_v62  ;;  %v2294_v62 = vld [vmem:[%s3290_s3 + $0x120] ss:$8 sps:$4 sm:$0xff]  }
  0xd7   :  { %969 = vmatprep.subr.bf16.mxu1 %v2016_v63  ;;  %v2299_v63 = vld [vmem:[%s3290_s3 + $0x134] ss:$8 sps:$4 sm:$0xff]  }
  0xda   :  { %970 = vmatpush1.bf16.msra.mxu1 %v2015_v2  ;;  %v2300_v2 = vld [vmem:[%s3290_s3 + $0x140] ss:$8 sps:$4 sm:$0xff]  }
  0xdb   :  { %971 = vmatprep.subr.bf16.mxu1 %v2024_v3  ;;  %v2305_v3 = vld [vmem:[%s3290_s3 + $0x154] ss:$8 sps:$4 sm:$0xff]  }
  0xde   :  { %972 = vmatpush1.bf16.msra.mxu1 %v2023_v6  ;;  %v2306_v6 = vld [vmem:[%s3290_s3 + $0x160] ss:$8 sps:$4 sm:$0xff]  }
  0xdf   :  { %973 = vmatprep.subr.bf16.mxu1 %v2032_v7  ;;  %v2311_v7 = vld [vmem:[%s3290_s3 + $0x174] ss:$8 sps:$4 sm:$0xff]  }
  0xe2   :  { %974 = vmatpush1.bf16.msra.mxu1 %v2031_v11  ;;  %v2312_v11 = vld [vmem:[%s3290_s3 + $0x180] ss:$8 sps:$4 sm:$0xff]  }
  0xe3   :  { %975 = vmatprep.subr.bf16.mxu1 %v2040_v12  ;;  %v2317_v12 = vld [vmem:[%s3290_s3 + $0x194] ss:$8 sps:$4 sm:$0xff]  }
  0xe6   :  { %976 = vmatpush1.bf16.msra.mxu1 %v2039_v15  ;;  %v2318_v15 = vld [vmem:[%s3290_s3 + $0x1a0] ss:$8 sps:$4 sm:$0xff]  }
  0xe7   :  { %977 = vmatprep.subr.bf16.mxu1 %v2048_v16  ;;  %v2323_v16 = vld [vmem:[%s3290_s3 + $0x1b4] ss:$8 sps:$4 sm:$0xff]  }
  0xea   :  { %978 = vmatpush1.bf16.msra.mxu1 %v2047_v19  ;;  %v2324_v19 = vld [vmem:[%s3290_s3 + $0x1c0] ss:$8 sps:$4 sm:$0xff]  }
  0xeb   :  { %979 = vmatprep.subr.bf16.mxu1 %v2056_v20  ;;  %v2329_v20 = vld [vmem:[%s3290_s3 + $0x1d4] ss:$8 sps:$4 sm:$0xff]  }
  0xee   :  { %980 = vmatpush1.bf16.msra.mxu1 %v2055_v24  ;;  %v170_v24 = vsub.s32 3, %v2966_v44 }
  0xef   :  { %981 = vmatprep.subr.bf16.mxu1 %v2064_v25  ;;  %v2332_v25 = vld [vmem:[%s3290_s3 + $0x1e4] ss:$8 sps:$4 sm:$0xff]  }
  0xf0   :  { %v171_v27 = vrot.slane %v2972_v46, %v170_v24  ;;  %v2386_v24 = vld [vmem:[%s3290_s3 + $0x304] ss:$8 sps:$4 sm:$0xff]  }
  0xf2   :  { %982 = vmatpush1.bf16.msra.mxu1 %v2063_v28  ;;  %v2330_v28 = vld [vmem:[%s3290_s3 + $0x1e0] ss:$8 sps:$4 sm:$0xff]  }
  0xf3   :  { %983 = vmatprep.subr.bf16.mxu1 %v2072_v29  ;;  %v2335_v29 = vld [vmem:[%s3290_s3 + $0x1f4] ss:$8 sps:$4 sm:$0xff]  }
  0xf6   :  { %984 = vmatpush1.bf16.msra.mxu1 %v2071_v32 }
  0xf7   :  { %985 = vmatprep.subr.bf16.mxu1 %v2080_v33 }
  0xfa   :  { %986 = vmatpush1.bf16.msra.mxu1 %v2079_v36 }
  0xfb   :  { %987 = vmatprep.subr.bf16.mxu1 %v2088_v37 }
  0xfe   :  { %988 = vmatpush1.bf16.msra.mxu1 %v2087_v40 }
  0xff   :  { %989 = vmatprep.subr.bf16.mxu1 %v2096_v41 }
 0x102   :  { %990 = vmatpush1.bf16.msra.mxu1 %v2095_v42  ;;  %v2336_v42 = vld [vmem:[%s3290_s3 + $0x200] ss:$8 sps:$4 sm:$0xff]  }
 0x105   :  { %992 = vmatmul.mubr.bf16.vlgmr.msra.gmra.mrb[12].mxu1 %v2582_v8  ;;  %v163_v8 = vrot.slane %v2972_v46, %v162_v47 }
 0x118   :  { %v870_v49 = vpop.f32.mrb[0].mxu1 }
 0x119   :  { %v871_v50 = vadd.f32 %v870_v49, %v159_v48  ;;  %v872_v51 = vpop.f32.mrb[1].mxu1  ;;  %v2339_v48 = vld [vmem:[%s3290_s3 + $0x210] ss:$8 sps:$4 sm:$0xff]   ;;  %v2342_v49 = vld [vmem:[%s3290_s3 + $0x220] ss:$8 sps:$4 sm:$0xff]  }
 0x11a   :  { %v873_v52 = vadd.f32 %v872_v51, %v163_v8  ;;  %v874_v53 = vpop.f32.mrb[2].mxu1  ;;  %v2344_v8 = vld [vmem:[%s3290_s3 + $0x224] ss:$8 sps:$4 sm:$0xff]   ;;  %v2345_v51 = vld [vmem:[%s3290_s3 + $0x230] ss:$8 sps:$4 sm:$0xff]  }
 0x11b   :  { %v1000_v54 = vmax.f32 %v871_v50, 0.0  ;;  %v875_v55 = vpop.f32.mrb[3].mxu1  ;;  %v2347_v50 = vld [vmem:[%s3290_s3 + $0x234] ss:$8 sps:$4 sm:$0xff]   ;;  %v2348_v53 = vld [vmem:[%s3290_s3 + $0x240] ss:$8 sps:$4 sm:$0xff]  }
 0x11c   :  { %v1001_v56 = vmax.f32 %v873_v52, 0.0  ;;  %v2350_v52 = vld [vmem:[%s3290_s3 + $0x244] ss:$8 sps:$4 sm:$0xff]   ;;  %v2351_v55 = vld [vmem:[%s3290_s3 + $0x250] ss:$8 sps:$4 sm:$0xff]  }
 0x11d   :  { %v1008_v57 = vpack.c.bf16 %v1000_v54, %v1000_v54  ;;  %v2353_v54 = vld [vmem:[%s3290_s3 + $0x254] ss:$8 sps:$4 sm:$0xff]  }
 0x11e   :  { %v1009_v21 = vpack.c.bf16 %v1001_v56, %v1001_v56  ;;  %v2356_v56 = vld [vmem:[%s3290_s3 + $0x264] ss:$8 sps:$4 sm:$0xff]  }
 0x120   :  { %1828 = vmatprep.mubr.bf16.mxu0 %v1009_v21  ;;  %v2359_v21 = vld [vmem:[%s3290_s3 + $0x274] ss:$8 sps:$4 sm:$0xff]  }
 0x121   :  { %1829 = vmatmul.mubr.bf16.vlgmr.msra.gmra.mrb[0].mxu0 %v1008_v57  ;;  %v2354_v57 = vld [vmem:[%s3290_s3 + $0x260] ss:$8 sps:$4 sm:$0xff]  }
 0x122   :  { %1838 = vmatpush1.bf16.msra.mxu0 %v2288_v58  ;;  %v2357_v58 = vld [vmem:[%s3290_s3 + $0x270] ss:$8 sps:$4 sm:$0xff]  }
 0x123   :  { %1839 = vmatprep.subr.bf16.mxu0 %v2293_v59  ;;  %v2362_v59 = vld [vmem:[%s3290_s3 + $0x284] ss:$8 sps:$4 sm:$0xff]  }
 0x126   :  { %1840 = vmatpush1.bf16.msra.mxu0 %v2291_v60  ;;  %v2360_v60 = vld [vmem:[%s3290_s3 + $0x280] ss:$8 sps:$4 sm:$0xff]  }
 0x127   :  { %1841 = vmatprep.subr.bf16.mxu0 %v2296_v61  ;;  %v2365_v61 = vld [vmem:[%s3290_s3 + $0x294] ss:$8 sps:$4 sm:$0xff]  }
 0x12a   :  { %1842 = vmatpush1.bf16.msra.mxu0 %v2294_v62  ;;  %v2363_v62 = vld [vmem:[%s3290_s3 + $0x290] ss:$8 sps:$4 sm:$0xff]  }
 0x12b   :  { %1843 = vmatprep.subr.bf16.mxu0 %v2299_v63  ;;  %v2368_v63 = vld [vmem:[%s3290_s3 + $0x2a4] ss:$8 sps:$4 sm:$0xff]  }
 0x12e   :  { %1844 = vmatpush1.bf16.msra.mxu0 %v2297_v0  ;;  %v2366_v0 = vld [vmem:[%s3290_s3 + $0x2a0] ss:$8 sps:$4 sm:$0xff]  }
 0x12f   :  { %1845 = vmatprep.subr.bf16.mxu0 %v2302_v1  ;;  %v2371_v1 = vld [vmem:[%s3290_s3 + $0x2b4] ss:$8 sps:$4 sm:$0xff]  }
 0x132   :  { %1846 = vmatpush1.bf16.msra.mxu0 %v2300_v2  ;;  %v2369_v2 = vld [vmem:[%s3290_s3 + $0x2b0] ss:$8 sps:$4 sm:$0xff]  }
 0x133   :  { %1847 = vmatprep.subr.bf16.mxu0 %v2305_v3  ;;  %v2374_v3 = vld [vmem:[%s3290_s3 + $0x2c4] ss:$8 sps:$4 sm:$0xff]  }
 0x136   :  { %1848 = vmatpush1.bf16.msra.mxu0 %v2303_v4  ;;  %v2372_v4 = vld [vmem:[%s3290_s3 + $0x2c0] ss:$8 sps:$4 sm:$0xff]  }
 0x137   :  { %1849 = vmatprep.subr.bf16.mxu0 %v2308_v5  ;;  %v2377_v5 = vld [vmem:[%s3290_s3 + $0x2d4] ss:$8 sps:$4 sm:$0xff]  }
 0x13a   :  { %1850 = vmatpush1.bf16.msra.mxu0 %v2306_v6  ;;  %v174_v6 = vsub.s32 4, %v2966_v44 }
 0x13b   :  { %1851 = vmatprep.subr.bf16.mxu0 %v2311_v7  ;;  %v2375_v7 = vld [vmem:[%s3290_s3 + $0x2d0] ss:$8 sps:$4 sm:$0xff]  }
 0x13e   :  { %1852 = vmatpush1.bf16.msra.mxu0 %v2309_v9  ;;  %v178_v9 = vsub.s32 5, %v2966_v44 }
 0x13f   :  { %1853 = vmatprep.subr.bf16.mxu0 %v2314_v10  ;;  %v2380_v10 = vld [vmem:[%s3290_s3 + $0x2e4] ss:$8 sps:$4 sm:$0xff]  }
 0x142   :  { %1854 = vmatpush1.bf16.msra.mxu0 %v2312_v11  ;;  %v175_v11 = vrot.slane %v2972_v46, %v174_v6 }
 0x143   :  { %1855 = vmatprep.subr.bf16.mxu0 %v2317_v12  ;;  %v179_v12 = vrot.slane %v2972_v46, %v178_v9 }
 0x146   :  { %1856 = vmatpush1.bf16.msra.mxu0 %v2315_v13  ;;  %v2378_v13 = vld [vmem:[%s3290_s3 + $0x2e0] ss:$8 sps:$4 sm:$0xff]  }
 0x147   :  { %1857 = vmatprep.subr.bf16.mxu0 %v2320_v14  ;;  %v2383_v14 = vld [vmem:[%s3290_s3 + $0x2f4] ss:$8 sps:$4 sm:$0xff]  }
 0x14a   :  { %1858 = vmatpush1.bf16.msra.mxu0 %v2318_v15 }
 0x14b   :  { %1859 = vmatprep.subr.bf16.mxu0 %v2323_v16 }
 0x14e   :  { %1860 = vmatpush1.bf16.msra.mxu0 %v2321_v17 }
 0x14f   :  { %1861 = vmatprep.subr.bf16.mxu0 %v2326_v18 }
 0x152   :  { %1862 = vmatpush1.bf16.msra.mxu0 %v2324_v19 }
 0x153   :  { %1863 = vmatprep.subr.bf16.mxu0 %v2329_v20  ;;  %v2381_v20 = vld [vmem:[%s3290_s3 + $0x2f0] ss:$8 sps:$4 sm:$0xff]  }
 0x156   :  { %1864 = vmatpush1.bf16.msra.mxu0 %v2327_v23 }
 0x157   :  { %1865 = vmatprep.subr.bf16.mxu0 %v2332_v25 }
 0x158   :  { %v911_v30 = vpop.f32.mrb[4].mxu1 }
 0x159   :  { %v912_v31 = vadd.f32 %v911_v30, %v167_v26  ;;  %v913_v32 = vpop.f32.mrb[5].mxu1  ;;  %v2387_v30 = vld [vmem:[%s3290_s3 + $0x310] ss:$8 sps:$4 sm:$0xff]  }
 0x15a   :  { %v914_v33 = vadd.f32 %v913_v32, %v171_v27  ;;  %v915_v34 = vpop.f32.mrb[6].mxu1  ;;  %1866 = vmatpush1.bf16.msra.mxu0 %v2330_v28  ;;  %v2384_v28 = vld [vmem:[%s3290_s3 + $0x300] ss:$8 sps:$4 sm:$0xff]  }
 0x15b   :  { %v1002_v36 = vmax.f32 %v912_v31, 0.0  ;;  %v916_v37 = vpop.f32.mrb[7].mxu1  ;;  %1867 = vmatprep.subr.bf16.mxu0 %v2335_v29  ;;  %v2389_v29 = vld [vmem:[%s3290_s3 + $0x314] ss:$8 sps:$4 sm:$0xff]   ;;  %v2392_v31 = vld [vmem:[%s3290_s3 + $0x324] ss:$8 sps:$4 sm:$0xff]  }
 0x15c   :  { %v1003_v39 = vmax.f32 %v914_v33, 0.0  ;;  %v2390_v32 = vld [vmem:[%s3290_s3 + $0x320] ss:$8 sps:$4 sm:$0xff]   ;;  %v2395_v33 = vld [vmem:[%s3290_s3 + $0x334] ss:$8 sps:$4 sm:$0xff]  }
 0x15d   :  { %v1010_v40 = vpack.c.bf16 %v1002_v36, %v1002_v36  ;;  %v2393_v34 = vld [vmem:[%s3290_s3 + $0x330] ss:$8 sps:$4 sm:$0xff]   ;;  %v2396_v36 = vld [vmem:[%s3290_s3 + $0x340] ss:$8 sps:$4 sm:$0xff]   ;;  %v2401_v37 = vld [vmem:[%s3290_s3 + $0x354] ss:$8 sps:$4 sm:$0xff]  }
 0x15e   :  { %v1011_v41 = vpack.c.bf16 %v1003_v39, %v1003_v39  ;;  %1868 = vmatpush1.bf16.msra.mxu0 %v2333_v35  ;;  %v2398_v35 = vld [vmem:[%s3290_s3 + $0x344] ss:$8 sps:$4 sm:$0xff]  }
 0x15f   :  { %1878 = vmatprep.subr.bf16.mxu0 %v2338_v38  ;;  %v2399_v38 = vld [vmem:[%s3290_s3 + $0x350] ss:$8 sps:$4 sm:$0xff]   ;;  %v2404_v39 = vld [vmem:[%s3290_s3 + $0x364] ss:$8 sps:$4 sm:$0xff]  }
 0x160   :  { %1869 = vmatprep.mubr.bf16.mxu0 %v1011_v41  ;;  %v2407_v41 = vld [vmem:[%s3290_s3 + $0x374] ss:$8 sps:$4 sm:$0xff]  }
 0x161   :  { %1870 = vmatmul.mubr.bf16.vlgmr.msra.gmra.mrb[0].mxu0 %v1010_v40  ;;  %v2402_v40 = vld [vmem:[%s3290_s3 + $0x360] ss:$8 sps:$4 sm:$0xff]  }
 0x162   :  { %1879 = vmatpush1.bf16.msra.mxu0 %v2336_v42  ;;  %v2405_v42 = vld [vmem:[%s3290_s3 + $0x370] ss:$8 sps:$4 sm:$0xff]  }
 0x163   :  { %1880 = vmatprep.subr.bf16.mxu0 %v2341_v43  ;;  %v2410_v43 = vld [vmem:[%s3290_s3 + $0x384] ss:$8 sps:$4 sm:$0xff]  }
 0x166   :  { %1881 = vmatpush1.bf16.msra.mxu0 %v2339_v48  ;;  %v2408_v48 = vld [vmem:[%s3290_s3 + $0x380] ss:$8 sps:$4 sm:$0xff]  }
 0x167   :  { %1882 = vmatprep.subr.bf16.mxu0 %v2344_v8  ;;  %v2413_v8 = vld [vmem:[%s3290_s3 + $0x394] ss:$8 sps:$4 sm:$0xff]  }
 0x16a   :  { %1883 = vmatpush1.bf16.msra.mxu0 %v2342_v49  ;;  %v2411_v49 = vld [vmem:[%s3290_s3 + $0x390] ss:$8 sps:$4 sm:$0xff]  }
 0x16b   :  { %1884 = vmatprep.subr.bf16.mxu0 %v2347_v50  ;;  %v2416_v50 = vld [vmem:[%s3290_s3 + $0x3a4] ss:$8 sps:$4 sm:$0xff]  }
 0x16e   :  { %1885 = vmatpush1.bf16.msra.mxu0 %v2345_v51  ;;  %v2414_v51 = vld [vmem:[%s3290_s3 + $0x3a0] ss:$8 sps:$4 sm:$0xff]  }
 0x16f   :  { %1886 = vmatprep.subr.bf16.mxu0 %v2350_v52  ;;  %v2419_v52 = vld [vmem:[%s3290_s3 + $0x3b4] ss:$8 sps:$4 sm:$0xff]  }
 0x172   :  { %1887 = vmatpush1.bf16.msra.mxu0 %v2348_v53  ;;  %v2417_v53 = vld [vmem:[%s3290_s3 + $0x3b0] ss:$8 sps:$4 sm:$0xff]  }
 0x173   :  { %1888 = vmatprep.subr.bf16.mxu0 %v2353_v54  ;;  %v2422_v54 = vld [vmem:[%s3290_s3 + $0x3c4] ss:$8 sps:$4 sm:$0xff]  }
 0x176   :  { %1889 = vmatpush1.bf16.msra.mxu0 %v2351_v55  ;;  %v2420_v55 = vld [vmem:[%s3290_s3 + $0x3c0] ss:$8 sps:$4 sm:$0xff]  }
 0x177   :  { %1890 = vmatprep.subr.bf16.mxu0 %v2356_v56  ;;  %v2425_v56 = vld [vmem:[%s3290_s3 + $0x3d4] ss:$8 sps:$4 sm:$0xff]  }
 0x17a   :  { %1891 = vmatpush1.bf16.msra.mxu0 %v2354_v57  ;;  %v182_v57 = vsub.s32 6, %v2966_v44 }
 0x17b   :  { %1892 = vmatprep.subr.bf16.mxu0 %v2359_v21  ;;  %v2423_v21 = vld [vmem:[%s3290_s3 + $0x3d0] ss:$8 sps:$4 sm:$0xff]  }
 0x17e   :  { %1893 = vmatpush1.bf16.msra.mxu0 %v2357_v58  ;;  %v186_v58 = vsub.s32 7, %v2966_v44 }
 0x17f   :  { %1894 = vmatprep.subr.bf16.mxu0 %v2362_v59  ;;  %v2428_v59 = vld [vmem:[%s3290_s3 + $0x3e4] ss:$8 sps:$4 sm:$0xff]  }
 0x182   :  { %1895 = vmatpush1.bf16.msra.mxu0 %v2360_v60  ;;  %v183_v60 = vrot.slane %v2972_v46, %v182_v57 }
 0x183   :  { %1896 = vmatprep.subr.bf16.mxu0 %v2365_v61  ;;  %v187_v61 = vrot.slane %v2972_v46, %v186_v58 }
 0x186   :  { %1897 = vmatpush1.bf16.msra.mxu0 %v2363_v62  ;;  %v2426_v62 = vld [vmem:[%s3290_s3 + $0x3e0] ss:$8 sps:$4 sm:$0xff]  }
 0x187   :  { %1898 = vmatprep.subr.bf16.mxu0 %v2368_v63  ;;  %v2431_v63 = vld [vmem:[%s3290_s3 + $0x3f4] ss:$8 sps:$4 sm:$0xff]  }
 0x18a   :  { %1899 = vmatpush1.bf16.msra.mxu0 %v2366_v0 }
 0x18b   :  { %1900 = vmatprep.subr.bf16.mxu0 %v2371_v1 }
 0x18e   :  { %1901 = vmatpush1.bf16.msra.mxu0 %v2369_v2 }
 0x18f   :  { %1902 = vmatprep.subr.bf16.mxu0 %v2374_v3 }
 0x192   :  { %1903 = vmatpush1.bf16.msra.mxu0 %v2372_v4 }
 0x193   :  { %1904 = vmatprep.subr.bf16.mxu0 %v2377_v5  ;;  %v2429_v5 = vld [vmem:[%s3290_s3 + $0x3f0] ss:$8 sps:$4 sm:$0xff]  }
 0x196   :  { %1905 = vmatpush1.bf16.msra.mxu0 %v2375_v7 }
 0x197   :  { %1906 = vmatprep.subr.bf16.mxu0 %v2380_v10 }
 0x198   :  { %v952_v15 = vpop.f32.mrb[8].mxu1 }
 0x199   :  { %v953_v16 = vadd.f32 %v952_v15, %v175_v11  ;;  %v954_v17 = vpop.f32.mrb[9].mxu1  ;;  %v1144_v11 = vld [vmem:[%s3292_s4] sm:$0x3] }
 0x19a   :  { %v955_v18 = vadd.f32 %v954_v17, %v179_v12  ;;  %v956_v19 = vpop.f32.mrb[10].mxu1  ;;  %1907 = vmatpush1.bf16.msra.mxu0 %v2378_v13  ;;  %v1149_v12 = vrot.slane %v1144_v11, %v158_v45  ;;  %v1153_v13 = vrot.slane %v1144_v11, %v162_v47 }
 0x19b   :  { %v1004_v22 = vmax.f32 %v953_v16, 0.0  ;;  %v957_v23 = vpop.f32.mrb[11].mxu1  ;;  %1908 = vmatprep.subr.bf16.mxu0 %v2383_v14 }
 0x19c   :  { %v1005_v25 = vmax.f32 %v955_v18, 0.0 }
 0x19d   :  { %v1012_v26 = vpack.c.bf16 %v1004_v22, %v1004_v22 }
 0x19e   :  { %v1013_v27 = vpack.c.bf16 %v1005_v25, %v1005_v25  ;;  %1909 = vmatpush1.bf16.msra.mxu0 %v2381_v20 }
 0x19f   :  { %1919 = vmatprep.subr.bf16.mxu0 %v2386_v24 }
 0x1a0   :  { %1910 = vmatprep.mubr.bf16.mxu0 %v1013_v27 }
 0x1a1   :  { %1911 = vmatmul.mubr.bf16.vlgmr.msra.gmra.mrb[0].mxu0 %v1012_v26 }
 0x1a2   :  { %1920 = vmatpush1.bf16.msra.mxu0 %v2384_v28 }
 0x1a3   :  { %1921 = vmatprep.subr.bf16.mxu0 %v2389_v29 }
 0x1a6   :  { %1922 = vmatpush1.bf16.msra.mxu0 %v2387_v30 }
 0x1a7   :  { %1923 = vmatprep.subr.bf16.mxu0 %v2392_v31 }
 0x1aa   :  { %1924 = vmatpush1.bf16.msra.mxu0 %v2390_v32 }
 0x1ab   :  { %1925 = vmatprep.subr.bf16.mxu0 %v2395_v33 }
 0x1ae   :  { %1926 = vmatpush1.bf16.msra.mxu0 %v2393_v34 }
 0x1af   :  { %1927 = vmatprep.subr.bf16.mxu0 %v2398_v35 }
 0x1b2   :  { %1928 = vmatpush1.bf16.msra.mxu0 %v2396_v36 }
 0x1b3   :  { %1929 = vmatprep.subr.bf16.mxu0 %v2401_v37 }
 0x1b6   :  { %1930 = vmatpush1.bf16.msra.mxu0 %v2399_v38 }
 0x1b7   :  { %1931 = vmatprep.subr.bf16.mxu0 %v2404_v39 }
 0x1ba   :  { %1932 = vmatpush1.bf16.msra.mxu0 %v2402_v40 }
 0x1bb   :  { %1933 = vmatprep.subr.bf16.mxu0 %v2407_v41 }
 0x1be   :  { %1934 = vmatpush1.bf16.msra.mxu0 %v2405_v42 }
 0x1bf   :  { %1935 = vmatprep.subr.bf16.mxu0 %v2410_v43 }
 0x1c2   :  { %1936 = vmatpush1.bf16.msra.mxu0 %v2408_v48 }
 0x1c3   :  { %1937 = vmatprep.subr.bf16.mxu0 %v2413_v8 }
 0x1c6   :  { %1938 = vmatpush1.bf16.msra.mxu0 %v2411_v49 }
 0x1c7   :  { %1939 = vmatprep.subr.bf16.mxu0 %v2416_v50 }
 0x1ca   :  { %1940 = vmatpush1.bf16.msra.mxu0 %v2414_v51 }
 0x1cb   :  { %1941 = vmatprep.subr.bf16.mxu0 %v2419_v52 }
 0x1ce   :  { %1942 = vmatpush1.bf16.msra.mxu0 %v2417_v53 }
 0x1cf   :  { %1943 = vmatprep.subr.bf16.mxu0 %v2422_v54 }
 0x1d2   :  { %1944 = vmatpush1.bf16.msra.mxu0 %v2420_v55 }
 0x1d3   :  { %1945 = vmatprep.subr.bf16.mxu0 %v2425_v56 }
 0x1d6   :  { %1946 = vmatpush1.bf16.msra.mxu0 %v2423_v21 }
 0x1d7   :  { %1947 = vmatprep.subr.bf16.mxu0 %v2428_v59 }
 0x1d8   :  { %v993_v0 = vpop.f32.mrb[12].mxu1 }
 0x1d9   :  { %v994_v1 = vadd.f32 %v993_v0, %v183_v60  ;;  %v995_v2 = vpop.f32.mrb[13].mxu1 }
 0x1da   :  { %v996_v3 = vadd.f32 %v995_v2, %v187_v61  ;;  %v997_v4 = vpop.f32.mrb[14].mxu1  ;;  %1948 = vmatpush1.bf16.msra.mxu0 %v2426_v62 }
 0x1db   :  { %v1006_v46 = vmax.f32 %v994_v1, 0.0  ;;  %v998_v6 = vpop.f32.mrb[15].mxu1  ;;  %1949 = vmatprep.subr.bf16.mxu0 %v2431_v63 }
 0x1dc   :  { %v1007_v7 = vmax.f32 %v996_v3, 0.0 }
 0x1dd   :  { %v1014_v10 = vpack.c.bf16 %v1006_v46, %v1006_v46 }
 0x1de   :  { %v1015_v9 = vpack.c.bf16 %v1007_v7, %v1007_v7  ;;  %1950 = vmatpush1.bf16.msra.mxu0 %v2429_v5 }
 0x1e0   :  { %1951 = vmatprep.mubr.bf16.mxu0 %v1015_v9 }
 0x1e1   :  { %1952 = vmatmul.mubr.bf16.vlgmr.msra.gmra.mrb[0].mxu0 %v1014_v10 }
 0x2b4   :  { %v1953_v14 = vpop.f32.mrb[0].mxu0 }
 0x2b5   :  { %v2225_v15 = vadd.f32 %v1953_v14, %v1149_v12  ;;  %v1955_v16 = vpop.f32.mrb[1].mxu0 }
 0x2b6   :  { %v2226_v17 = vadd.f32 %v1955_v16, %v1153_v13  ;;  %v1957_v18 = vpop.f32.mrb[2].mxu0 }
 0x2b7   :  { %v1958_v19 = vpop.f32.mrb[3].mxu0 }
 0x2b8   :  { %v1962_v20 = vcombine.low %v2225_v15, %v2226_v17 }
 0x2ba   :  { %1964 = vst [vmem:[%s3293_s5] sm:$0xff] %v1962_v20 }

</bundles_post_ra>
